<compile_context>
chip_gen: v5e
topology: v5e:2x2
jax: 0.10.0
libtpu: 0.0.40
codegen_flags: <defaults>
</compile_context>

<pallas_src>
import jax
import jax.numpy as jnp
from jax.experimental import pallas as pl
from jax.experimental.pallas import tpu as pltpu


def _linreg_kernel(b_ref, x_ref, w_ref, o_ref):
    # x_ref: (TILE_N, p) VMEM, w_ref: (p, 1) VMEM, b_ref: (1, 1) SMEM,
    # o_ref: (TILE_N, 1) VMEM
    o_ref[...] = (
        jnp.dot(x_ref[...], w_ref[...], preferred_element_type=jnp.float32)
        + b_ref[0, 0]
    )


def _round_up(v, m):
    return ((v + m - 1) // m) * m


def _pick_tile_n(n, p, max_tile=1024, vmem_budget_bytes=16 * 1024 * 1024):
    """Large row-tile (multiple of 8) whose double-buffered footprint stays
    well inside scoped VMEM on all chips (v7x has only 64 MiB physical)."""
    # 2 in-flight x buffers of (tile_n, p) f32 must fit the budget.
    cap_from_vmem = max(8, vmem_budget_bytes // (2 * p * 4))
    tile_n = min(max_tile, cap_from_vmem, _round_up(n, 8))
    return _round_up(max(tile_n, 8), 8)


def linear_regression_forward(x, weight, bias):
    """x: (N, p) f32, weight: (1, p) f32, bias: (1,) f32 -> (N, 1) f32."""
    n, p = x.shape
    w_t = weight.reshape(p, 1)          # glue: transpose/reshape in plain JAX
    b = bias.reshape(1, 1)

    tile_n = _pick_tile_n(n, p)
    grid = (pl.cdiv(n, tile_n),)

    # NOTE: the (N, 1) output is narrower than a full 128-lane store (masked
    # vst); for tiny p this op is best fused into its producer by XLA, the
    # standalone kernel only pays off at large N. Semantics kept as-is.
    return pl.pallas_call(
        _linreg_kernel,
        out_shape=jax.ShapeDtypeStruct((n, 1), jnp.float32),
        grid=grid,
        in_specs=[
            pl.BlockSpec(memory_space=pltpu.SMEM),            # bias scalar
            pl.BlockSpec((tile_n, p), lambda i: (i, 0)),      # x: streamed tiles
            pl.BlockSpec((p, 1), lambda i: (0, 0)),           # w^T: resident
        ],
        out_specs=pl.BlockSpec((tile_n, 1), lambda i: (i, 0)),
        compiler_params=pltpu.CompilerParams(
            dimension_semantics=("parallel",),                # megacore on v7x
        ),
        cost_estimate=pl.CostEstimate(
            flops=2 * n * p,
            bytes_accessed=4 * (n * p + p + n + 1),
            transcendentals=0,
        ),
    )(b, x, w_t)


if __name__ == "__main__":
    key = jax.random.PRNGKey(0)
    kx, kw, kb = jax.random.split(key, 3)

    N, P = 8, 32  # small synthetic shapes: batch=8, p=32 features

    x = jax.random.normal(kx, (N, P), dtype=jnp.float32)

    # Deterministic parameter init (PyTorch nn.Linear default: U(-1/sqrt(p), 1/sqrt(p)))
    bound = 1.0 / jnp.sqrt(jnp.float32(P))
    weight = jax.random.uniform(kw, (1, P), dtype=jnp.float32, minval=-bound, maxval=bound)
    bias = jax.random.uniform(kb, (1,), dtype=jnp.float32, minval=-bound, maxval=bound)

    y = linear_regression_forward(x, weight, bias)
    y = jax.block_until_ready(y)

    # Cross-check against plain-JAX reference.
    y_ref = x @ weight.T + bias
    assert y.shape == (N, 1)
    assert jnp.allclose(y, y_ref, atol=1e-5, rtol=1e-5)

    # Also sanity-check a larger, non-multiple-of-tile batch to exercise the
    # tiled/pipelined path (partial last tile).
    N2 = 2048 + 24
    x2 = jax.random.normal(jax.random.PRNGKey(1), (N2, P), dtype=jnp.float32)
    y2 = jax.block_until_ready(linear_regression_forward(x2, weight, bias))
    y2_ref = x2 @ weight.T + bias
    assert y2.shape == (N2, 1)
    assert jnp.allclose(y2, y2_ref, atol=1e-5, rtol=1e-5)

    print("KERNEL_OK")
</pallas_src>

<mosaic_0001>
module attributes {stable_mosaic.version = 11 : i64} {
  func.func @_linreg_kernel(%arg0: i32, %arg1: memref<1x1xf32, #tpu.memory_space<smem>>, %arg2: memref<8x32xf32, #tpu.memory_space<vmem>>, %arg3: memref<32x1xf32, #tpu.memory_space<vmem>>, %arg4: memref<8x1xf32, #tpu.memory_space<vmem>>) attributes {dimension_semantics = [#tpu.dimension_semantics<parallel>], iteration_bounds = array<i64: 1>, scalar_prefetch = 0 : i64, scratch_operands = 0 : i64, tpu.core_type = #tpu.core_type<tc>, window_params = [{transform_indices = @transform_0, window_bounds = array<i64: 1, 1>}, {transform_indices = @transform_1, window_bounds = array<i64: 8, 32>}, {pipeline_mode = #tpu.pipeline_mode<synchronous>, transform_indices = @transform_2, window_bounds = array<i64: 32, 1>}, {transform_indices = @transform_3, window_bounds = array<i64: 8, 1>}]} {
    %c0 = arith.constant 0 : index
    %c0_0 = arith.constant 0 : index
    %0 = vector.load %arg2[%c0, %c0_0] : memref<8x32xf32, #tpu.memory_space<vmem>>, vector<8x32xf32>
    %c0_1 = arith.constant 0 : index
    %c0_2 = arith.constant 0 : index
    %1 = vector.load %arg3[%c0_1, %c0_2] : memref<32x1xf32, #tpu.memory_space<vmem>>, vector<32x1xf32>
    %cst = arith.constant dense<0.000000e+00> : vector<8x1xf32>
    %2 = tpu.matmul %0, %1, %cst {dimension_numbers = #tpu.dot_dimension_numbers<[1], [0], [0], [1], [0, 0, 1, 1], [], []>} : vector<8x32xf32>, vector<32x1xf32>, vector<8x1xf32> -> vector<8x1xf32>
    %c0_3 = arith.constant 0 : index
    %c0_4 = arith.constant 0 : index
    %3 = memref.load %arg1[%c0_3, %c0_4] : memref<1x1xf32, #tpu.memory_space<smem>>
    %4 = vector.broadcast %3 : f32 to vector<8x1xf32>
    %5 = arith.addf %2, %4 : vector<8x1xf32>
    %c0_5 = arith.constant 0 : index
    %c0_6 = arith.constant 0 : index
    %6 = vector.load %arg4[%c0_5, %c0_6] : memref<8x1xf32, #tpu.memory_space<vmem>>, vector<8x1xf32>
    tpu.vector_store %arg4[%c0_5, %c0_6], %5 {strides = array<i32>} : memref<8x1xf32, #tpu.memory_space<vmem>>, vector<8x1xf32>,
    return
  }
  func.func @transform_0(%arg0: i32) -> (i32, i32) {
    %c0_i32 = arith.constant 0 : i32
    %c0_i32_0 = arith.constant 0 : i32
    %c0_i32_1 = arith.constant 0 : i32
    return %c0_i32, %c0_i32_0 : i32, i32
  }
  func.func @transform_1(%arg0: i32) -> (i32, i32) {
    %c0_i32 = arith.constant 0 : i32
    %c0_i32_0 = arith.constant 0 : i32
    return %arg0, %c0_i32 : i32, i32
  }
  func.func @transform_2(%arg0: i32) -> (i32, i32) {
    %c0_i32 = arith.constant 0 : i32
    %c0_i32_0 = arith.constant 0 : i32
    %c0_i32_1 = arith.constant 0 : i32
    return %c0_i32, %c0_i32_0 : i32, i32
  }
  func.func @transform_3(%arg0: i32) -> (i32, i32) {
    %c0_i32 = arith.constant 0 : i32
    %c0_i32_0 = arith.constant 0 : i32
    return %arg0, %c0_i32 : i32, i32
  }
}

</mosaic_0001>

<bundles_post_ra>
// kernel: tpu_custom_call.1
= control target key start
LH: loop header
LB: loop body
LE: loop exit
PB: predicated region body
PF: predicated region fallthrough
CT: control target
= control target key end

     0   :  { %vm22_vm0 = vcmask 261120   ;;  %vm46_vm1 = vcmask 7168   ;;  %s94_s2 = inlined_call_operand.vmem [shape: f32[32,1], index: 2, kind: input, shape index: {}]   ;;  %s95_s1 = inlined_call_operand.vmem [shape: f32[8,32], index: 1, kind: input, shape index: {}]   ;;  %s96_s0 = inlined_call_operand.<no memory space> [shape: f32[1,1], index: 0, kind: input, shape index: {}]   ;;  %s97_s3 = inlined_call_operand.vmem [shape: f32[8,1], index: 3, kind: output, shape index: {}]  }
   0x1   :  { %v19_v0 = vld [vmem:[%s94_s2 + $0x18] sm:$0xff]  ;;  %v18_v1 = vld [vmem:[%s94_s2 + $0x10] sm:$0xff]  ;;  %v17_v2 = vld [vmem:[%s94_s2 + $0x8] sm:$0xff]  ;;  %v21_v5 = vstv %s96_s0 }
   0x2   :  { %38 = vmatpush.msra.mxu0 %v19_v0  ;;  %v16_v3 = vld [vmem:[%s94_s2] sm:$0xff] }
   0x3   :  { %v15_v4 = vld [vmem:[%s95_s1] sm:$0xff] }
   0x4   :  { %39 = vmatpush.msra.mxu0 %v18_v1 }
   0x6   :  { %40 = vmatpush.msra.mxu0 %v17_v2 }
   0x8   :  { %41 = vmatpush.msra.mxu0 %v16_v3 }
   0x9   :  { %52 = vmatmul.msk.f32.vlgmr.msra.gmra.mxu0 %vm22_vm0, %v15_v4 }
  0x86   :  { %v43_v6 = vpop.f32.mrf.mxu0 }
  0x87   :  { %v44_v7 = vadd.f32 %v43_v6, %v21_v5 }
  0x89   :  { %47 = vst.msk [vmem:[%s97_s3] sm:$0xff] %vm46_vm1, %v44_v7 }

</bundles_post_ra>
